<compile_context>
chip_gen: v7x
topology: tpu7x:2x2x1
jax: 0.10.0
libtpu: 0.0.40
codegen_flags: <defaults>
</compile_context>

<pallas_src>
import math

import jax
import jax.numpy as jnp
from jax.experimental import pallas as pl
from jax.experimental.pallas import tpu as pltpu

BN_EPS = 1e-5
COMPUTE_DTYPE = jnp.bfloat16     # MXU operand dtype; accumulation stays f32
_H1, _H2, _C = 100, 50, 2        # DNN([D, 100, 50, 2])
_LANE = 128
_SUBLANE = 8


def _round_up(a, b):
    return ((a + b - 1) // b) * b


def _cdiv(a, b):
    return (a + b - 1) // b


def _auxiliary_net_impl(x, gamma, beta, w1, b1, w2, b2, w3, b3):
    B, T, D = x.shape
    N = B * T
    x2 = x.reshape(N, D)                     # f32 row view (no cast, no pad)

    # --------------------------------------------------------------------- #
    # Pass 1: per-feature sum / sum-of-squares over all rows (f32, one sweep)
    # --------------------------------------------------------------------- #
    # ~2 MiB f32 blocks: big enough to hide per-step overhead, small enough
    # (double-buffered ~4 MiB) for every generation incl. v7x's 64 MiB VMEM.
    row_tile = _round_up(max(1, (2 << 20) // (4 * D)), _SUBLANE)
    row_tile = max(_SUBLANE, min(row_tile, 8192))
    row_tile = min(row_tile, _round_up(N, _SUBLANE))
    nblk = _cdiv(N, row_tile)
    n_split = 2 if nblk >= 2 else 1          # both TensorCores on v7x
    bps = _cdiv(nblk, n_split)               # row blocks per split

    def stats_kernel(x_ref, s1_ref, s2_ref):
        s = pl.program_id(0)
        i = pl.program_id(1)

        @pl.when(i == 0)
        def _init():
            s1_ref[...] = jnp.zeros_like(s1_ref)
            s2_ref[...] = jnp.zeros_like(s2_ref)

        # Mask rows past N (ragged tail / clamped overhang blocks of a split).
        row0 = (s * bps + i) * row_tile
        rows = row0 + jax.lax.broadcasted_iota(jnp.int32, (row_tile, 1), 0)
        xv = jnp.where(rows < N, x_ref[...].astype(jnp.float32), 0.0)
        s1_ref[...] += jnp.sum(xv, axis=0, keepdims=True)
        s2_ref[...] += jnp.sum(xv * xv, axis=0, keepdims=True)

    def x_stats_map(s, i):
        # Clamp so overhang steps re-read a valid block; the in-kernel row
        # mask zeroes their contribution.
        return (jnp.minimum(s * bps + i, nblk - 1), 0)

    s1p, s2p = pl.pallas_call(
        stats_kernel,
        out_shape=(jax.ShapeDtypeStruct((n_split, 1, D), jnp.float32),
                   jax.ShapeDtypeStruct((n_split, 1, D), jnp.float32)),
        grid_spec=pltpu.PrefetchScalarGridSpec(
            num_scalar_prefetch=0,
            grid=(n_split, bps),
            in_specs=[pl.BlockSpec((row_tile, D), x_stats_map)],
            out_specs=[pl.BlockSpec((None, 1, D), lambda s, i: (s, 0, 0)),
                       pl.BlockSpec((None, 1, D), lambda s, i: (s, 0, 0))],
        ),
        compiler_params=pltpu.CompilerParams(
            dimension_semantics=("parallel", "arbitrary"),
            vmem_limit_bytes=32 * 1024 * 1024),
    )(x2)

    s1 = jnp.sum(s1p, axis=0)                # (1, D)
    s2 = jnp.sum(s2p, axis=0)                # (1, D)

    inv_n = 1.0 / float(N)
    mean = s1 * inv_n
    var = jnp.maximum(s2 * inv_n - mean * mean, 0.0)   # biased (training) var
    a = gamma * jax.lax.rsqrt(var + BN_EPS)            # (1, D)
    c = beta - mean * a                                # (1, D)
    # TODO(synk): BatchNorm running-mean/var buffer updates (training-time
    # side effect) are not modeled; they do not affect the forward output.

    # --------------------------------------------------------------------- #
    # Fold BN into the first Linear; zero-pad hidden dims to 128 lanes.
    # --------------------------------------------------------------------- #
    h1p = _round_up(_H1, _LANE)   # 100 -> 128
    h2p = _round_up(_H2, _LANE)   # 50  -> 128
    cp = _SUBLANE                 # 2   -> 8 sublanes for the tiny final GEMM

    w1f = a.T * w1                                     # (D, 100)
    b1f = c @ w1 + b1                                  # (1, 100)

    w1p = jnp.pad(w1f, ((0, 0), (0, h1p - _H1))).astype(COMPUTE_DTYPE)
    b1p = jnp.pad(b1f, ((0, 0), (0, h1p - _H1)))
    w2p = jnp.pad(w2, ((0, h1p - _H1), (0, h2p - _H2))).astype(COMPUTE_DTYPE)
    b2p = jnp.pad(b2, ((0, 0), (0, h2p - _H2)))
    w3tp = jnp.pad(w3.T, ((0, cp - _C), (0, h2p - _H2))).astype(COMPUTE_DTYPE)
    b3tp = jnp.pad(b3.reshape(_C, 1), ((0, cp - _C), (0, 0)))

    # --------------------------------------------------------------------- #
    # Pass 2: slab GEMMs (Bb whole batch elements per step) + per-batch
    # transposed final GEMM with lane-dense softmax over the sequence axis.
    # --------------------------------------------------------------------- #
    target_rows = 1024                        # keeps the 256x256 MXU fed
    Bb = max(1, _cdiv(target_rows, T))
    mult = _SUBLANE // math.gcd(T, _SUBLANE)  # make Bb*T a multiple of 8 ...
    Bb = _round_up(Bb, mult)
    Bb = min(Bb, B)
    if (Bb * T) % _SUBLANE != 0 and Bb * T != N:
        Bb = B                                # ... or use the full row extent
    R = Bb * T                                # rows per slab
    grid_b = _cdiv(B, Bb)

    def mlp_softmax_kernel(x_ref, w1_ref, b1_ref, w2_ref, b2_ref,
                           w3t_ref, b3t_ref, out_ref, h2_ref):
        xv = x_ref[...].astype(COMPUTE_DTYPE)          # bf16 cast in-kernel
        h1 = jnp.dot(xv, w1_ref[...],
                     preferred_element_type=jnp.float32) + b1_ref[...]
        h2 = jnp.dot(h1.astype(COMPUTE_DTYPE), w2_ref[...],
                     preferred_element_type=jnp.float32) + b2_ref[...]
        h2_ref[...] = h2                               # (R, h2p) f32 scratch
        w3t = w3t_ref[...]
        b3t = b3t_ref[...]

        def per_batch(b, carry):
            start = b * T
            if T % _SUBLANE == 0:
                start = pl.multiple_of(start, _SUBLANE)
            h2b = h2_ref[pl.ds(start, T), :].astype(COMPUTE_DTYPE)  # (T, h2p)
            # Transposed final GEMM: (cp, h2p) . (T, h2p)^T -> (cp, T); the
            # sequence axis lands on lanes -> lane-dense softmax reduction.
            y = jax.lax.dot_general(
                w3t, h2b, dimension_numbers=(((1,), (1,)), ((), ())),
                preferred_element_type=jnp.float32) + b3t
            y2 = y[:_C, :]                             # (2, T) real classes
            m = jnp.max(y2, axis=-1, keepdims=True)
            e = jnp.exp(y2 - m)
            ssum = jnp.sum(e, axis=-1, keepdims=True)
            out_ref[b] = e / ssum                      # exact normalization
            return carry

        jax.lax.fori_loop(0, Bb, per_batch, 0)

    out = pl.pallas_call(
        mlp_softmax_kernel,
        out_shape=jax.ShapeDtypeStruct((B, _C, T), jnp.float32),
        grid_spec=pltpu.PrefetchScalarGridSpec(
            num_scalar_prefetch=0,
            grid=(grid_b,),
            in_specs=[
                pl.BlockSpec((R, D), lambda s: (s, 0)),       # slab of rows
                pl.BlockSpec((D, h1p), lambda s: (0, 0)),     # resident weights
                pl.BlockSpec((1, h1p), lambda s: (0, 0)),
                pl.BlockSpec((h1p, h2p), lambda s: (0, 0)),
                pl.BlockSpec((1, h2p), lambda s: (0, 0)),
                pl.BlockSpec((cp, h2p), lambda s: (0, 0)),
                pl.BlockSpec((cp, 1), lambda s: (0, 0)),
            ],
            out_specs=pl.BlockSpec((Bb, _C, T), lambda s: (s, 0, 0)),
            scratch_shapes=[pltpu.VMEM((R, h2p), jnp.float32)],
        ),
        compiler_params=pltpu.CompilerParams(
            dimension_semantics=("parallel",),                # both TCs on v7x
            vmem_limit_bytes=32 * 1024 * 1024),
    )(x2, w1p, b1p, w2p, b2p, w3tp, b3tp)

    # (B, 2, T) -> (B, T, 2): tiny wrapper-side transpose.
    return out.transpose(0, 2, 1)


auxiliary_net = jax.jit(_auxiliary_net_impl)


# ---------------------------------------------------------------------------
# Helpers / reference / self-check
# ---------------------------------------------------------------------------
def _init_linear(key, fan_in, fan_out):
    kw, kb = jax.random.split(key)
    bound = 1.0 / (fan_in ** 0.5)
    w = jax.random.uniform(kw, (fan_in, fan_out), jnp.float32, -bound, bound)
    b = jax.random.uniform(kb, (1, fan_out), jnp.float32, -bound, bound)
    return w, b


def _reference(x, gamma, beta, w1, b1, w2, b2, w3, b3):
    B, T, D = x.shape
    xf = x.reshape(-1, D)
    mean = jnp.mean(xf, axis=0, keepdims=True)
    var = jnp.mean((xf - mean) ** 2, axis=0, keepdims=True)
    xb = (xf - mean) / jnp.sqrt(var + BN_EPS) * gamma + beta
    y = ((xb @ w1 + b1) @ w2 + b2) @ w3 + b3
    return jax.nn.softmax(y.reshape(B, T, -1), axis=1)


if __name__ == "__main__":
    B, T, D = 2, 8, 32  # batch, sequence length, input_size

    key = jax.random.PRNGKey(0)
    kx, kg, kb, k1, k2, k3 = jax.random.split(key, 6)

    x = jax.random.normal(kx, (B, T, D), jnp.float32)
    gamma = jnp.ones((1, D), jnp.float32) + 0.1 * jax.random.normal(kg, (1, D))
    beta = 0.1 * jax.random.normal(kb, (1, D), jnp.float32)
    w1, b1 = _init_linear(k1, D, _H1)
    w2, b2 = _init_linear(k2, _H1, _H2)
    w3, b3 = _init_linear(k3, _H2, _C)

    out = auxiliary_net(x, gamma, beta, w1, b1, w2, b2, w3, b3)
    out = jax.block_until_ready(out)

    ref = _reference(x, gamma, beta, w1, b1, w2, b2, w3, b3)
    assert out.shape == (B, T, _C)
    # bf16 MXU operands with f32 accumulation -> modest tolerance vs f32 ref
    assert jnp.allclose(out, ref, atol=2e-2, rtol=2e-2), "mismatch vs JAX reference"
    # softmax over the sequence axis sums to 1 per (batch, class) — exact divide
    assert jnp.allclose(out.sum(axis=1), 1.0, atol=1e-3)

    print("KERNEL_OK")
</pallas_src>

<mosaic_0001>
module attributes {stable_mosaic.version = 11 : i64} {
  func.func @stats_kernel(%arg0: i32, %arg1: i32, %arg2: memref<16x32xf32, #tpu.memory_space<vmem>>, %arg3: memref<1x1x32xf32, #tpu.memory_space<vmem>>, %arg4: memref<1x1x32xf32, #tpu.memory_space<vmem>>) attributes {dimension_semantics = [#tpu.dimension_semantics<parallel>, #tpu.dimension_semantics<arbitrary>], iteration_bounds = array<i64: 1, 1>, scalar_prefetch = 0 : i64, scratch_operands = 0 : i64, tpu.core_type = #tpu.core_type<tc>, window_params = [{transform_indices = @transform_0, window_bounds = array<i64: 16, 32>}, {transform_indices = @transform_1, window_bounds = array<i64: 1, 1, 32>}, {transform_indices = @transform_2, window_bounds = array<i64: 1, 1, 32>}]} {
    %c0_i32 = arith.constant 0 : i32
    %0 = arith.cmpi eq, %arg1, %c0_i32 : i32
    %1 = arith.extui %0 : i1 to i32
    %c0_i32_0 = arith.constant 0 : i32
    %2 = arith.cmpi ne, %1, %c0_i32_0 : i32
    scf.if %2 {
      %cst_17 = arith.constant 0.000000e+00 : f32
      %33 = vector.broadcast %cst_17 : f32 to vector<1x32xf32>
      %c0_18 = arith.constant 0 : index
      %c0_19 = arith.constant 0 : index
      %c0_20 = arith.constant 0 : index
      %34 = vector.load %arg3[%c0_18, %c0_19, %c0_20] : memref<1x1x32xf32, #tpu.memory_space<vmem>>, vector<1x1x32xf32>
      %35 = vector.shape_cast %34 : vector<1x1x32xf32> to vector<1x32xf32>
      %36 = vector.shape_cast %33 : vector<1x32xf32> to vector<1x1x32xf32>
      tpu.vector_store %arg3[%c0_18, %c0_19, %c0_20], %36 {strides = array<i32>} : memref<1x1x32xf32, #tpu.memory_space<vmem>>, vector<1x1x32xf32>,
      %cst_21 = arith.constant 0.000000e+00 : f32
      %37 = vector.broadcast %cst_21 : f32 to vector<1x32xf32>
      %c0_22 = arith.constant 0 : index
      %c0_23 = arith.constant 0 : index
      %c0_24 = arith.constant 0 : index
      %38 = vector.load %arg4[%c0_22, %c0_23, %c0_24] : memref<1x1x32xf32, #tpu.memory_space<vmem>>, vector<1x1x32xf32>
      %39 = vector.shape_cast %38 : vector<1x1x32xf32> to vector<1x32xf32>
      %40 = vector.shape_cast %37 : vector<1x32xf32> to vector<1x1x32xf32>
      tpu.vector_store %arg4[%c0_22, %c0_23, %c0_24], %40 {strides = array<i32>} : memref<1x1x32xf32, #tpu.memory_space<vmem>>, vector<1x1x32xf32>,
    } else {
    }
    %c1_i32 = arith.constant 1 : i32
    %3 = arith.muli %arg0, %c1_i32 : i32
    %4 = arith.addi %3, %arg1 : i32
    %c16_i32 = arith.constant 16 : i32
    %5 = arith.muli %4, %c16_i32 : i32
    %6 = tpu.iota {dimensions = array<i32: 0>} : vector<16x1xi32>
    %7 = vector.broadcast %5 : i32 to vector<16x1xi32>
    %8 = arith.addi %7, %6 : vector<16x1xi32>
    %c16_i32_1 = arith.constant 16 : i32
    %9 = vector.broadcast %c16_i32_1 : i32 to vector<16x1xi32>
    %10 = arith.cmpi slt, %8, %9 : vector<16x1xi32>
    %c0 = arith.constant 0 : index
    %c0_2 = arith.constant 0 : index
    %11 = vector.load %arg2[%c0, %c0_2] : memref<16x32xf32, #tpu.memory_space<vmem>>, vector<16x32xf32>
    %cst = arith.constant 0.000000e+00 : f32
    %12 = vector.shape_cast %10 : vector<16x1xi1> to vector<16x1xi1>
    %13 = vector.broadcast %12 : vector<16x1xi1> to vector<16x32xi1>
    %14 = vector.broadcast %cst : f32 to vector<16x32xf32>
    %15 = arith.select %13, %11, %14 : vector<16x32xi1>, vector<16x32xf32>
    %c0_3 = arith.constant 0 : index
    %c0_4 = arith.constant 0 : index
    %c0_5 = arith.constant 0 : index
    %16 = vector.load %arg3[%c0_3, %c0_4, %c0_5] : memref<1x1x32xf32, #tpu.memory_space<vmem>>, vector<1x1x32xf32>
    %17 = vector.shape_cast %16 : vector<1x1x32xf32> to vector<1x32xf32>
    %cst_6 = arith.constant dense<0.000000e+00> : vector<32xf32>
    %18 = vector.multi_reduction <add>, %15, %cst_6 [0] : vector<16x32xf32> to vector<32xf32>
    %19 = vector.shape_cast %18 : vector<32xf32> to vector<1x32xf32>
    %20 = arith.addf %17, %19 : vector<1x32xf32>
    %c0_7 = arith.constant 0 : index
    %c0_8 = arith.constant 0 : index
    %c0_9 = arith.constant 0 : index
    %21 = vector.load %arg3[%c0_7, %c0_8, %c0_9] : memref<1x1x32xf32, #tpu.memory_space<vmem>>, vector<1x1x32xf32>
    %22 = vector.shape_cast %21 : vector<1x1x32xf32> to vector<1x32xf32>
    %23 = vector.shape_cast %20 : vector<1x32xf32> to vector<1x1x32xf32>
    tpu.vector_store %arg3[%c0_7, %c0_8, %c0_9], %23 {strides = array<i32>} : memref<1x1x32xf32, #tpu.memory_space<vmem>>, vector<1x1x32xf32>,
    %c0_10 = arith.constant 0 : index
    %c0_11 = arith.constant 0 : index
    %c0_12 = arith.constant 0 : index
    %24 = vector.load %arg4[%c0_10, %c0_11, %c0_12] : memref<1x1x32xf32, #tpu.memory_space<vmem>>, vector<1x1x32xf32>
    %25 = vector.shape_cast %24 : vector<1x1x32xf32> to vector<1x32xf32>
    %26 = arith.mulf %15, %15 : vector<16x32xf32>
    %cst_13 = arith.constant dense<0.000000e+00> : vector<32xf32>
    %27 = vector.multi_reduction <add>, %26, %cst_13 [0] : vector<16x32xf32> to vector<32xf32>
    %28 = vector.shape_cast %27 : vector<32xf32> to vector<1x32xf32>
    %29 = arith.addf %25, %28 : vector<1x32xf32>
    %c0_14 = arith.constant 0 : index
    %c0_15 = arith.constant 0 : index
    %c0_16 = arith.constant 0 : index
    %30 = vector.load %arg4[%c0_14, %c0_15, %c0_16] : memref<1x1x32xf32, #tpu.memory_space<vmem>>, vector<1x1x32xf32>
    %31 = vector.shape_cast %30 : vector<1x1x32xf32> to vector<1x32xf32>
    %32 = vector.shape_cast %29 : vector<1x32xf32> to vector<1x1x32xf32>
    tpu.vector_store %arg4[%c0_14, %c0_15, %c0_16], %32 {strides = array<i32>} : memref<1x1x32xf32, #tpu.memory_space<vmem>>, vector<1x1x32xf32>,
    return
  }
  func.func @transform_0(%arg0: i32, %arg1: i32) -> (i32, i32) {
    %c1_i32 = arith.constant 1 : i32
    %0 = arith.muli %arg0, %c1_i32 : i32
    %1 = arith.addi %0, %arg1 : i32
    %c0_i32 = arith.constant 0 : i32
    %2 = arith.minsi %1, %c0_i32 : i32
    %c0_i32_0 = arith.constant 0 : i32
    %c0_i32_1 = arith.constant 0 : i32
    return %2, %c0_i32_0 : i32, i32
  }
  func.func @transform_1(%arg0: i32, %arg1: i32) -> (i32, i32, i32) {
    %c0_i32 = arith.constant 0 : i32
    %c0_i32_0 = arith.constant 0 : i32
    %c0_i32_1 = arith.constant 0 : i32
    return %arg0, %c0_i32, %c0_i32_0 : i32, i32, i32
  }
  func.func @transform_2(%arg0: i32, %arg1: i32) -> (i32, i32, i32) {
    %c0_i32 = arith.constant 0 : i32
    %c0_i32_0 = arith.constant 0 : i32
    %c0_i32_1 = arith.constant 0 : i32
    return %arg0, %c0_i32, %c0_i32_0 : i32, i32, i32
  }
}

module attributes {stable_mosaic.version = 11 : i64} {
  func.func @mlp_softmax_kernel(%arg0: i32, %arg1: memref<16x32xf32, #tpu.memory_space<vmem>>, %arg2: memref<32x128xbf16, #tpu.memory_space<vmem>>, %arg3: memref<1x128xf32, #tpu.memory_space<vmem>>, %arg4: memref<128x128xbf16, #tpu.memory_space<vmem>>, %arg5: memref<1x128xf32, #tpu.memory_space<vmem>>, %arg6: memref<8x128xbf16, #tpu.memory_space<vmem>>, %arg7: memref<8x1xf32, #tpu.memory_space<vmem>>, %arg8: memref<2x2x8xf32, #tpu.memory_space<vmem>>, %arg9: memref<16x128xf32, #tpu.memory_space<vmem>>) attributes {dimension_semantics = [#tpu.dimension_semantics<parallel>], iteration_bounds = array<i64: 1>, scalar_prefetch = 0 : i64, scratch_operands = 1 : i64, tpu.core_type = #tpu.core_type<tc>, window_params = [{transform_indices = @transform_0, window_bounds = array<i64: 16, 32>}, {pipeline_mode = #tpu.pipeline_mode<synchronous>, transform_indices = @transform_1, window_bounds = array<i64: 32, 128>}, {pipeline_mode = #tpu.pipeline_mode<synchronous>, transform_indices = @transform_2, window_bounds = array<i64: 1, 128>}, {pipeline_mode = #tpu.pipeline_mode<synchronous>, transform_indices = @transform_3, window_bounds = array<i64: 128, 128>}, {pipeline_mode = #tpu.pipeline_mode<synchronous>, transform_indices = @transform_4, window_bounds = array<i64: 1, 128>}, {pipeline_mode = #tpu.pipeline_mode<synchronous>, transform_indices = @transform_5, window_bounds = array<i64: 8, 128>}, {pipeline_mode = #tpu.pipeline_mode<synchronous>, transform_indices = @transform_6, window_bounds = array<i64: 8, 1>}, {transform_indices = @transform_7, window_bounds = array<i64: 2, 2, 8>}]} {
    %c0 = arith.constant 0 : index
    %c0_0 = arith.constant 0 : index
    %0 = vector.load %arg1[%c0, %c0_0] : memref<16x32xf32, #tpu.memory_space<vmem>>, vector<16x32xf32>
    %1 = arith.truncf %0 : vector<16x32xf32> to vector<16x32xbf16>
    %c0_1 = arith.constant 0 : index
    %c0_2 = arith.constant 0 : index
    %2 = vector.load %arg2[%c0_1, %c0_2] : memref<32x128xbf16, #tpu.memory_space<vmem>>, vector<32x128xbf16>
    %cst = arith.constant dense<0.000000e+00> : vector<16x128xf32>
    %3 = tpu.matmul %1, %2, %cst {dimension_numbers = #tpu.dot_dimension_numbers<[1], [0], [0], [1], [0, 0, 1, 1], [], []>} : vector<16x32xbf16>, vector<32x128xbf16>, vector<16x128xf32> -> vector<16x128xf32>
    %c0_3 = arith.constant 0 : index
    %c0_4 = arith.constant 0 : index
    %4 = vector.load %arg3[%c0_3, %c0_4] : memref<1x128xf32, #tpu.memory_space<vmem>>, vector<1x128xf32>
    %5 = vector.broadcast %4 : vector<1x128xf32> to vector<16x128xf32>
    %6 = arith.addf %3, %5 : vector<16x128xf32>
    %7 = arith.truncf %6 : vector<16x128xf32> to vector<16x128xbf16>
    %c0_5 = arith.constant 0 : index
    %c0_6 = arith.constant 0 : index
    %8 = vector.load %arg4[%c0_5, %c0_6] : memref<128x128xbf16, #tpu.memory_space<vmem>>, vector<128x128xbf16>
    %cst_7 = arith.constant dense<0.000000e+00> : vector<16x128xf32>
    %9 = tpu.matmul %7, %8, %cst_7 {dimension_numbers = #tpu.dot_dimension_numbers<[1], [0], [0], [1], [0, 0, 1, 1], [], []>} : vector<16x128xbf16>, vector<128x128xbf16>, vector<16x128xf32> -> vector<16x128xf32>
    %c0_8 = arith.constant 0 : index
    %c0_9 = arith.constant 0 : index
    %10 = vector.load %arg5[%c0_8, %c0_9] : memref<1x128xf32, #tpu.memory_space<vmem>>, vector<1x128xf32>
    %11 = vector.broadcast %10 : vector<1x128xf32> to vector<16x128xf32>
    %12 = arith.addf %9, %11 : vector<16x128xf32>
    %c0_10 = arith.constant 0 : index
    %c0_11 = arith.constant 0 : index
    %13 = vector.load %arg9[%c0_10, %c0_11] : memref<16x128xf32, #tpu.memory_space<vmem>>, vector<16x128xf32>
    tpu.vector_store %arg9[%c0_10, %c0_11], %12 {strides = array<i32>} : memref<16x128xf32, #tpu.memory_space<vmem>>, vector<16x128xf32>,
    %c0_12 = arith.constant 0 : index
    %c0_13 = arith.constant 0 : index
    %14 = vector.load %arg6[%c0_12, %c0_13] : memref<8x128xbf16, #tpu.memory_space<vmem>>, vector<8x128xbf16>
    %c0_14 = arith.constant 0 : index
    %c0_15 = arith.constant 0 : index
    %15 = vector.load %arg7[%c0_14, %c0_15] : memref<8x1xf32, #tpu.memory_space<vmem>>, vector<8x1xf32>
    %c0_i32 = arith.constant 0 : i32
    %c2_i32 = arith.constant 2 : i32
    %16 = arith.addi %c0_i32, %c2_i32 : i32
    %c1_i32 = arith.constant 1 : i32
    scf.for %arg10 = %c0_i32 to %16 step %c1_i32  : i32 {
      %c8_i32 = arith.constant 8 : i32
      %17 = arith.muli %arg10, %c8_i32 : i32
      %18 = tpu.assume_multiple %17, 8 : i32
      %19 = arith.index_cast %18 : i32 to index
      %c0_17 = arith.constant 0 : index
      %20 = vector.load %arg9[%19, %c0_17] : memref<16x128xf32, #tpu.memory_space<vmem>>, vector<8x128xf32>
      %21 = arith.truncf %20 : vector<8x128xf32> to vector<8x128xbf16>
      %cst_18 = arith.constant dense<0.000000e+00> : vector<8x8xf32>
      %22 = tpu.matmul %14, %21, %cst_18 {dimension_numbers = #tpu.dot_dimension_numbers<[1], [1], [0], [0], [0, 0, 1, 0], [], []>} : vector<8x128xbf16>, vector<8x128xbf16>, vector<8x8xf32> -> vector<8x8xf32>
      %23 = vector.broadcast %15 : vector<8x1xf32> to vector<8x8xf32>
      %24 = arith.addf %22, %23 : vector<8x8xf32>
      %25 = vector.extract_strided_slice %24 {offsets = [0, 0], sizes = [2, 8], strides = [1, 1]} : vector<8x8xf32> to vector<2x8xf32>
      %cst_19 = arith.constant dense<0xFF800000> : vector<2xf32>
      %26 = vector.multi_reduction <maximumf>, %25, %cst_19 [1] : vector<2x8xf32> to vector<2xf32>
      %27 = vector.shape_cast %26 : vector<2xf32> to vector<2x1xf32>
      %28 = vector.broadcast %27 : vector<2x1xf32> to vector<2x8xf32>
      %29 = arith.subf %25, %28 : vector<2x8xf32>
      %30 = math.exp %29 : vector<2x8xf32>
      %cst_20 = arith.constant dense<0.000000e+00> : vector<2xf32>
      %31 = vector.multi_reduction <add>, %30, %cst_20 [1] : vector<2x8xf32> to vector<2xf32>
      %32 = vector.shape_cast %31 : vector<2xf32> to vector<2x1xf32>
      %33 = vector.broadcast %32 : vector<2x1xf32> to vector<2x8xf32>
      %34 = arith.divf %30, %33 : vector<2x8xf32>
      %35 = arith.index_cast %arg10 : i32 to index
      %c0_21 = arith.constant 0 : index
      %c0_22 = arith.constant 0 : index
      %36 = vector.load %arg8[%35, %c0_21, %c0_22] : memref<2x2x8xf32, #tpu.memory_space<vmem>>, vector<1x2x8xf32>
      %37 = vector.shape_cast %36 : vector<1x2x8xf32> to vector<2x8xf32>
      %38 = vector.shape_cast %34 : vector<2x8xf32> to vector<1x2x8xf32>
      tpu.vector_store %arg8[%35, %c0_21, %c0_22], %38 {strides = array<i32>} : memref<2x2x8xf32, #tpu.memory_space<vmem>>, vector<1x2x8xf32>,
    }
    %c2_i32_16 = arith.constant 2 : i32
    return
  }
  func.func @transform_0(%arg0: i32) -> (i32, i32) {
    %c0_i32 = arith.constant 0 : i32
    %c0_i32_0 = arith.constant 0 : i32
    return %arg0, %c0_i32 : i32, i32
  }
  func.func @transform_1(%arg0: i32) -> (i32, i32) {
    %c0_i32 = arith.constant 0 : i32
    %c0_i32_0 = arith.constant 0 : i32
    %c0_i32_1 = arith.constant 0 : i32
    return %c0_i32, %c0_i32_0 : i32, i32
  }
  func.func @transform_2(%arg0: i32) -> (i32, i32) {
    %c0_i32 = arith.constant 0 : i32
    %c0_i32_0 = arith.constant 0 : i32
    %c0_i32_1 = arith.constant 0 : i32
    return %c0_i32, %c0_i32_0 : i32, i32
  }
  func.func @transform_3(%arg0: i32) -> (i32, i32) {
    %c0_i32 = arith.constant 0 : i32
    %c0_i32_0 = arith.constant 0 : i32
    %c0_i32_1 = arith.constant 0 : i32
    return %c0_i32, %c0_i32_0 : i32, i32
  }
  func.func @transform_4(%arg0: i32) -> (i32, i32) {
    %c0_i32 = arith.constant 0 : i32
    %c0_i32_0 = arith.constant 0 : i32
    %c0_i32_1 = arith.constant 0 : i32
    return %c0_i32, %c0_i32_0 : i32, i32
  }
  func.func @transform_5(%arg0: i32) -> (i32, i32) {
    %c0_i32 = arith.constant 0 : i32
    %c0_i32_0 = arith.constant 0 : i32
    %c0_i32_1 = arith.constant 0 : i32
    return %c0_i32, %c0_i32_0 : i32, i32
  }
  func.func @transform_6(%arg0: i32) -> (i32, i32) {
    %c0_i32 = arith.constant 0 : i32
    %c0_i32_0 = arith.constant 0 : i32
    %c0_i32_1 = arith.constant 0 : i32
    return %c0_i32, %c0_i32_0 : i32, i32
  }
  func.func @transform_7(%arg0: i32) -> (i32, i32, i32) {
    %c0_i32 = arith.constant 0 : i32
    %c0_i32_0 = arith.constant 0 : i32
    %c0_i32_1 = arith.constant 0 : i32
    return %arg0, %c0_i32, %c0_i32_0 : i32, i32, i32
  }
}

</mosaic_0001>

<bundles_post_ra>
// kernel: _auxiliary_net_impl.2
= control target key start
LH: loop header
LB: loop body
LE: loop exit
PB: predicated region body
PF: predicated region fallthrough
CT: control target
= control target key end

     0   :  { %vm46_vm0 = vcmask 253952   ;;  %vm68_vm1 = vcmask 261120   ;;  %v110_v0 = vmov 0.0   ;;  %s154_s0 = inlined_call_operand.vmem [shape: f32[16,32], index: 0, kind: input, shape index: {}]   ;;  %s155_s1 = inlined_call_operand.vmem [shape: f32[1,1,32], index: 1, kind: output, shape index: {0}]   ;;  %s156_s2 = inlined_call_operand.vmem [shape: f32[1,1,32], index: 2, kind: output, shape index: {1}]  }
   0x1   :  { %47 = vst.msk [vmem:[%s155_s1] sm:$0x1] %vm46_vm0, %v110_v0  ;;  %v59_v1 = vld [vmem:[%s154_s0] sm:$0xff]  ;;  %v60_v2 = vld [vmem:[%s154_s0 + $0x8] sm:$0xff]  ;;  %48 = vst.msk [vmem:[%s156_s2] sm:$0x1] %vm46_vm0, %v110_v0 }
   0x2   :  { %v69_v3 = vsel %vm68_vm1, %v59_v1, 0.0  ;;  %v70_v4 = vsel %vm68_vm1, %v60_v2, 0.0  ;;  %v82_v5 = vmul.f32 %v59_v1, %v59_v1  ;;  %v83_v6 = vmul.f32 %v60_v2, %v60_v2 }
   0x3   :  { %v71_v7 = vadd.f32 %v70_v4, %v69_v3 }
   0x4   :  { %v84_v8 = vsel %vm68_vm1, %v82_v5, 0.0  ;;  %v85_v9 = vsel %vm68_vm1, %v83_v6, 0.0 }
   0x5   :  { %v72_v10 = vrot.slane %v71_v7, 4  ;;  %v86_v11 = vadd.f32 %v85_v9, %v84_v8 }
   0x7   :  { %v73_v12 = vadd.f32 %v72_v10, %v71_v7  ;;  %v87_v13 = vrot.slane %v86_v11, 4 }
   0x8   :  { %v67_v20 = vld [vmem:[%s155_s1] sm:$0x1] }
   0x9   :  { %v74_v14 = vrot.slane %v73_v12, 2  ;;  %v88_v15 = vadd.f32 %v87_v13, %v86_v11  ;;  %v81_v23 = vld [vmem:[%s156_s2] sm:$0x1] }
   0xb   :  { %v75_v16 = vadd.f32 %v74_v14, %v73_v12  ;;  %v89_v17 = vrot.slane %v88_v15, 2 }
   0xd   :  { %v76_v18 = vrot.slane %v75_v16, 1  ;;  %v90_v19 = vadd.f32 %v89_v17, %v88_v15 }
   0xf   :  { %v77_v21 = vadd.f32 %v76_v18, %v75_v16  ;;  %v91_v22 = vrot.slane %v90_v19, 1 }
  0x11   :  { %v78_v24 = vadd.f32 %v77_v21, %v67_v20  ;;  %v92_v25 = vadd.f32 %v91_v22, %v90_v19 }
  0x13   :  { %80 = vst.msk [vmem:[%s155_s1] sm:$0x1] %vm46_vm0, %v78_v24  ;;  %v93_v26 = vadd.f32 %v92_v25, %v81_v23 }
  0x15   :  { %94 = vst.msk [vmem:[%s156_s2] sm:$0x1] %vm46_vm0, %v93_v26 }

// kernel: _auxiliary_net_impl.3
= control target key start
LH: loop header
LB: loop body
LE: loop exit
PB: predicated region body
PF: predicated region fallthrough
CT: control target
= control target key end

     0   :  { %12 = vsyncpa [#allocation4], 0  ;;  %v437_v1 = vmov 0.0   ;;  %vm438_vm0 = vmmov 0   ;;  %vm54_vm1 = vcmask 261120   ;;  %s558_s0 = inlined_call_operand.vmem [shape: f32[16,32], index: 0, kind: input, shape index: {}]   ;;  %s559_s1 = inlined_call_operand.vmem [shape: bf16[32,128], index: 1, kind: input, shape index: {}]   ;;  %s560_s2 = inlined_call_operand.vmem [shape: f32[1,128], index: 2, kind: input, shape index: {}]   ;;  %s561_s3 = inlined_call_operand.vmem [shape: bf16[128,128], index: 3, kind: input, shape index: {}]   ;;  %s562_s4 = inlined_call_operand.vmem [shape: f32[1,128], index: 4, kind: input, shape index: {}]   ;;  %s563_s5 = inlined_call_operand.vmem [shape: bf16[8,128], index: 5, kind: input, shape index: {}]   ;;  %s564_s6 = inlined_call_operand.vmem [shape: f32[8,1], index: 6, kind: input, shape index: {}]   ;;  %s565_s7 = inlined_call_operand.hbm [shape: f32[2,2,8], index: 7, kind: output, shape index: {}]  }
   0x1   :  { %v390_v0 = vld [vmem:[%s559_s1] sm:$0xff]   ;;  %340 = vmatprep.subr.bf16.mxu0 %v437_v1  ;;  %348 = vmatprep.subr.bf16.mxu1 %v437_v1  ;;  %v391_v2 = vld [vmem:[%s559_s1 + $0x8] sm:$0xff]   ;;  %v394_v8 = vld [vmem:[%s561_s3 + $0x10] sm:$0xff]  }
   0x2   :  { %341 = vmatpush3.bf16.msra.mxu0 %v390_v0  ;;  %v28_v3 = vld [vmem:[%s558_s0] sm:$0xff]  ;;  %v29_v4 = vld [vmem:[%s558_s0 + $0x8] sm:$0xff]  ;;  %344 = vmatprep.mubr.msk.bf16.mxu0 %vm438_vm0, %v437_v1  ;;  %v395_v9 = vld [vmem:[%s561_s3 + $0x18] sm:$0xff]  }
   0x3   :  { %342 = vmatprep.subr.bf16.mxu0 %v437_v1  ;;  %v392_v5 = vld [vmem:[%s561_s3] sm:$0xff]   ;;  %364 = vmatprep.mubr.msk.bf16.mxu1 %vm438_vm0, %v437_v1  ;;  %v30_v6 = vpack.c.bf16 %v29_v4, %v28_v3  ;;  %v393_v7 = vld [vmem:[%s561_s3 + $0x8] sm:$0xff]   ;;  %v398_v12 = vld [vmem:[%s561_s3 + $0x30] sm:$0xff]  }
   0x4   :  { %349 = vmatpush3.bf16.msra.mxu1 %v392_v5  ;;  %v396_v10 = vld [vmem:[%s561_s3 + $0x20] sm:$0xff]   ;;  %v397_v11 = vld [vmem:[%s561_s3 + $0x28] sm:$0xff]   ;;  %v399_v13 = vld [vmem:[%s561_s3 + $0x38] sm:$0xff]  }
   0x5   :  { %350 = vmatprep.subr.bf16.mxu1 %v437_v1  ;;  %v311_v14 = vld [vmem:[%s560_s2] ss:$0 sm:$0xff]  ;;  %s533_s2 = smov 0  }
   0x6   :  { %343 = vmatpush3.bf16.msra.mxu0 %v391_v2  ;;  %v214_v22 = vld [vmem:[%s563_s5] sm:$0xf] }
   0x7   :  { %v215_v23 = vld [vmem:[%s564_s6] sm:$0xff] }
   0x8   :  { %351 = vmatpush3.bf16.msra.mxu1 %v393_v7  ;;  %v315_v24 = vld [vmem:[%s562_s4] ss:$0 sm:$0xff] }
   0x9   :  { %345 = vmatmul.mubr.msk.bf16.vlgmr.msra.gmra.mrb[0].mxu0 %vm54_vm1, %v30_v6  ;;  %352 = vmatprep.subr.bf16.mxu1 %v437_v1 }
   0xc   :  { %353 = vmatpush3.bf16.msra.mxu1 %v394_v8 }
   0xd   :  { %354 = vmatprep.subr.bf16.mxu1 %v437_v1 }
  0x10   :  { %355 = vmatpush3.bf16.msra.mxu1 %v395_v9 }
  0x11   :  { %356 = vmatprep.subr.bf16.mxu1 %v437_v1 }
  0x14   :  { %357 = vmatpush3.bf16.msra.mxu1 %v396_v10 }
  0x15   :  { %358 = vmatprep.subr.bf16.mxu1 %v437_v1 }
  0x18   :  { %359 = vmatpush3.bf16.msra.mxu1 %v397_v11 }
  0x19   :  { %360 = vmatprep.subr.bf16.mxu1 %v437_v1 }
  0x1c   :  { %361 = vmatpush3.bf16.msra.mxu1 %v398_v12 }
  0x1d   :  { %362 = vmatprep.subr.bf16.mxu1 %v437_v1 }
  0x20   :  { %363 = vmatpush3.bf16.msra.mxu1 %v399_v13 }
  0xdc   :  { %v92_v15 = vpop.f32.mrb[0].mxu0 }
  0xdd   :  { %v346_v16 = vpop.f32.mrb[1].mxu0  ;;  %v93_v18 = vadd.f32 %v311_v14, %v92_v15 }
  0xde   :  { %v95_v17 = vpop.f32.mrb[2].mxu0 }
  0xdf   :  { %v96_v19 = vadd.f32 %v311_v14, %v95_v17  ;;  %v347_v20 = vpop.f32.mrb[3].mxu0 }
  0xe1   :  { %v99_v21 = vpack.c.bf16 %v96_v19, %v93_v18 }
  0xe3   :  { %365 = vmatmul.mubr.bf16.vlgmr.msra.gmra.mrb[0].mxu1 %v99_v21 }
 0x1b6   :  { %v205_v25 = vpop.f32.mrb[0].mxu1 }
 0x1b7   :  { %v206_v26 = vadd.f32 %v315_v24, %v205_v25  ;;  %v366_v27 = vpop.f32.mrb[1].mxu1 }
 0x1b8   :  { %v208_v28 = vpop.f32.mrb[2].mxu1 }
 0x1b9   :  { %212 = vst [vmem:[#allocation2] sm:$0xff] %v206_v26  ;;  %v209_v29 = vadd.f32 %v315_v24, %v208_v28  ;;  %v367_v30 = vpop.f32.mrb[3].mxu1 }
 0x1bb   :  { %213 = vst [vmem:[#allocation2 + $0x8] sm:$0xff] %v209_v29 }
 0x1bc LB: > { %v439_v31 = vmov 0.0   ;;  %vm440_vm2 = vmmov 0   ;;  %s324_s4 = sshll.u32 %s435_s2, 3  ;;  %v441_v32 = vmov 0   ;;  %vm271_vm3 = vcmask 58368   ;;  %s325_s6 = sshll.u32 %s435_s2, 1  ;;  %s435_s2 = sphi %s533_s2, %s221_s2  }
 0x1bd   : > { %368 = vmatprep.subr.bf16.mxu0 %v439_v31  ;;  %370 = vmatprep.mubr.msk.bf16.mxu0 %vm440_vm2, %v439_v31  ;;  %s223_s5 = scalar_lea.vmem [#allocation2], %s324_s4  ;;  %s284_s30 = scalar_lea.vmem [#allocation3], %s325_s6 }
 0x1be   : > { %400 = vset.pattern.permute.xlu0 %v441_v32  ;;  %s221_s2 = sadd.s32 1, %s435_s2  }
 0x1bf   : > { %228 = vperm.xlu0 %400, %v215_v23   ;;  %p218_p0 = scmp.ge.s32.totalorder %s221_s2, 2  }
 0x1c0   :  { %s442_s8 = smov (%p218_p0), [#allocation3]  }
 0x1c1   :  { %s291_s9 = sshll.u32 (%p218_p0), %s442_s8, 4  ;;  %s292_s9 = int_to_ptr.vmem [resolvable:$true] %s291_s9 }
 0x1c2   : > { %v224_v33 = vld [vmem:[%s223_s5] sm:$0xff]  ;;  %s405_s10 = scalar_lea.vmem (%p218_p0), %s292_s9, 64  ;;  %p410_p2 = scmp.lt.s32.totalorder (%p218_p0), %s292_s9, %s292_s9 }
 0x1c3   : > { %v225_v34 = vpack.c.bf16 %v224_v33, %v224_v33  ;;  %p406_p1 = scmp.ne.s32.totalorder (%p218_p0), %s292_s9, %s405_s10  ;;  %p411_p3 = scmp.lt.s32.totalorder (%p218_p0), %s405_s10, %s405_s10 }
 0x1c5   : > { %369 = vmatpush3.bf16.xpose.msra.mxu0 %v225_v34  ;;  %p412_p4 = por (%p218_p0), %p411_p3, %p410_p2 }
 0x1c7   :  { %p413_p5 = pnand (%p218_p0), %p412_p4, %p406_p1 }
 0x1cc   : > { %371 = vmatmul.mubr.bf16.vlgmr.msra.gmra.mrb[0].mxu0 %v214_v22 }
 0x23e   : > { %v229_v35 = vpop.permute.xlu0 %228 }
 0x29f   : > { %v265_v36 = vpop.f32.mrb[0].mxu0 }
 0x2a0   : > { %v266_v37 = vadd.f32 %v265_v36, %v229_v35  ;;  %v372_v38 = vpop.f32.mrb[1].mxu0 }
 0x2a1   : > { %v268_v39 = vpop.f32.mrb[2].mxu0 }
 0x2a2   : > { %v373_v40 = vpop.f32.mrb[3].mxu0  ;;  %v272_v41 = vsel %vm271_vm3, %v266_v37, -inf }
 0x2a3   : > { %273 = vmax.xlane.f32.xlu0 %v272_v41 }
 0x330   : > { %v274_v42 = vpop.xlane.xlu0 %273 }
 0x331   : > { %v275_v43 = vsub.f32 %v266_v37, %v274_v42 }
 0x333   : > { %v276_v44 = vmul.f32 1.442695, %v275_v43 }
 0x335   : > { %401 = vpow2.f32 %v276_v44 }
 0x33f   : > { %v402_v45 = vpop.eup %401 }
 0x340   : > { %v278_v46 = vsel %vm271_vm3, %v402_v45, 0.0 }
 0x341   : > { %279 = vadd.xlane.f32.xlu1 %v278_v46 }
 0x3ce   : > { %v280_v47 = vpop.xlane.xlu1 %279 }
 0x3cf   : > { %403 = vrcp.f32 %v280_v47 }
 0x3d6   :  { %220 = sbr.rel (!%p218_p0) target bundleno = 444 (0x1bc), region = 57 }
 0x3d9   : > { %v404_v48 = vpop.eup %403 }
 0x3da   : > { %v282_v49 = vmul.f32 %v404_v48, %v402_v45 }
 0x3dc   : > { %285 = vst.msk [vmem:[%s284_s30] sm:$0x3] %vm271_vm3, %v282_v49 }
 0x3dd   :  { %416 = shalt.err (!%p413_p5)
}
 0x3de   :  { %s417_s0 = scalar_lea.hbm %s565_s7, 64 }
 0x3df   :  { %p418_p6 = scmp.ne.s32.totalorder %s565_s7, %s417_s0  ;;  %p421_p7 = scmp.lt.u32.totalorder %s417_s0, %s565_s7 }
 0x3e1   :  { %p423_p8 = pnand %p421_p7, %p418_p6 }
 0x3e3   :  { %426 = shalt.err (!%p423_p8)
}
 0x3e4   :  { %s443_s16 = smov 32   ;;  %s444_s17 = smov 2  }
 0x3e5   :  { %297 = dma.vmem_to_hbm [thread:$0]  %s292_s9, 64, %s565_s7, [#allocation4], %s443_s16, %s443_s16, %s444_s17  }
 0x3e6   :  { %431 = dma.done.wait [#allocation4], 64  }
 0x3e7   :  { %432 = vsyncadd [#allocation4], 4294967232 }
 0x3e8   :  { %301 = vsyncpa [#allocation4], 1 }

</bundles_post_ra>
